<compile_context>
chip_gen: v7x
topology: tpu7x:2x2x1
jax: 0.10.0
libtpu: 0.0.40
codegen_flags: <defaults>
</compile_context>

<pallas_src>
import jax
import jax.numpy as jnp
from jax.experimental import pallas as pl
from jax.experimental.pallas import tpu as pltpu


LANES = 128


def critic_kernel(x_ref, w1_ref, b1_ref, w2_ref, b2_ref, o_ref):
    # x_ref:  [rows, 128]  lane-dense batch tile (batch on lanes)
    # w1_ref: [Hp, 128]    layer-1 weight, hidden on sublanes, lane-broadcast
    # b1_ref: [Hp, 128]    layer-1 bias, same layout
    # w2_ref: [Hp, 128]    layer-2 weight, same layout
    # b2_ref: [1, 128]     layer-2 bias, lane-broadcast
    # o_ref:  [rows, 128]  lane-dense output tile
    b2 = b2_ref[...]                                               # [1, 128]
    rows = o_ref.shape[0]
    for r in range(rows):                      # static, small unrolled loop
        x_row = x_ref[pl.ds(r, 1), :]                              # [1, 128]
        # Layer 1 (input_s == 1): VPU madd; one sublane-broadcast of x_row.
        h = jnp.maximum(x_row * w1_ref[...] + b1_ref[...], 0.0)    # [Hp, 128]
        # Layer 2 (output_s == 1): VPU mul + sublane-axis reduce (VALU adds).
        y = jnp.sum(h * w2_ref[...], axis=0, keepdims=True)        # [1, 128]
        o_ref[pl.ds(r, 1), :] = (y + b2).astype(o_ref.dtype)


def critic_forward(x, w1, b1, w2, b2, *, rows_per_tile=None):
    """Forward pass of Critic.

    x:  [B, 1]   (input_s == 1)
    w1: [1, H]   (transposed vs torch l1.weight)
    b1: [1, H]
    w2: [H, 1]   (transposed vs torch l2.weight)
    b2: [1, 1]
    returns [B, 1]
    """
    B, in_s = x.shape
    H = w1.shape[1]
    out_s = w2.shape[1]
    assert in_s == 1 and out_s == 1, "kernel specialized for input_s == output_s == 1"

    f32 = jnp.float32

    # ---- host-side layout prep (plumbing, not compute) ----------------------
    # Hidden dim on sublanes (padded to a multiple of 8); padded units have
    # zero w1/b1/w2 -> relu(0) = 0 -> contribute nothing to layer 2.
    Hp = pl.cdiv(H, 8) * 8
    w1c = jnp.pad(w1.astype(f32).reshape(H, 1), ((0, Hp - H), (0, 0)))
    b1c = jnp.pad(b1.astype(f32).reshape(H, 1), ((0, Hp - H), (0, 0)))
    w2c = jnp.pad(w2.astype(f32).reshape(H, 1), ((0, Hp - H), (0, 0)))
    # Pre-broadcast along lanes: each table is Hp*128*4 bytes (~60 KB).
    w1b = jnp.tile(w1c, (1, LANES))
    b1b = jnp.tile(b1c, (1, LANES))
    w2b = jnp.tile(w2c, (1, LANES))
    b2b = jnp.tile(b2.astype(f32).reshape(1, 1), (1, LANES))

    # Batch on lanes: one 128-wide row per 128 batch elements.  Small batches
    # -> single grid step (no forced split on 1-TC parts); large batches
    # -> 16 rows (2048 elements) of work per step.
    total_rows = pl.cdiv(B, LANES)
    if rows_per_tile is None:
        rows_per_tile = 16
    rows = max(1, min(rows_per_tile, total_rows))
    num_tiles = pl.cdiv(total_rows, rows)
    B_pad = num_tiles * rows * LANES

    xp = jnp.pad(x.astype(f32).reshape(B), (0, B_pad - B))
    xp = xp.reshape(num_tiles, rows, LANES)

    cost = pl.CostEstimate(
        flops=4 * B_pad * Hp,                       # 2 madd-ish per hidden unit per element
        transcendentals=0,
        bytes_accessed=2 * B_pad * 4 + (3 * Hp + 1) * LANES * 4,
    )

    out = pl.pallas_call(
        critic_kernel,
        out_shape=jax.ShapeDtypeStruct((num_tiles, rows, LANES), f32),
        grid=(num_tiles,),
        in_specs=[
            pl.BlockSpec((None, rows, LANES), lambda i: (i, 0, 0)),  # x (lane-dense)
            pl.BlockSpec((Hp, LANES), lambda i: (0, 0)),             # w1 (resident)
            pl.BlockSpec((Hp, LANES), lambda i: (0, 0)),             # b1
            pl.BlockSpec((Hp, LANES), lambda i: (0, 0)),             # w2
            pl.BlockSpec((1, LANES), lambda i: (0, 0)),              # b2
        ],
        out_specs=pl.BlockSpec((None, rows, LANES), lambda i: (i, 0, 0)),
        compiler_params=pltpu.CompilerParams(
            dimension_semantics=("parallel",) if num_tiles > 1 else ("arbitrary",)),
        cost_estimate=cost,
    )(xp, w1b, b1b, w2b, b2b)

    # Lane-dense slabs -> [B, 1]
    return out.reshape(B_pad, 1)[:B]


if __name__ == "__main__":
    # Module defaults: input_s=1, output_s=1, h_state=116
    input_s, output_s, h_state = 1, 1, 116
    batch = 256

    key = jax.random.PRNGKey(0)
    kx, kw1, kb1, kw2, kb2 = jax.random.split(key, 5)

    # Deterministic "small_weight_init"-style params: N(0, 0.5)
    x = jax.random.normal(kx, (batch, input_s), dtype=jnp.float32)
    w1 = 0.5 * jax.random.normal(kw1, (input_s, h_state), dtype=jnp.float32)
    b1 = 0.5 * jax.random.normal(kb1, (1, h_state), dtype=jnp.float32)
    w2 = 0.5 * jax.random.normal(kw2, (h_state, output_s), dtype=jnp.float32)
    b2 = 0.5 * jax.random.normal(kb2, (1, output_s), dtype=jnp.float32)

    out = jax.block_until_ready(critic_forward(x, w1, b1, w2, b2))

    # Pure-JAX reference check of forward semantics
    ref = jnp.maximum(x @ w1 + b1, 0.0) @ w2 + b2
    assert out.shape == (batch, output_s)
    assert jnp.allclose(out, ref, atol=1e-4, rtol=1e-5), "mismatch vs reference"

    # Ragged batch (exercises the batch-padding path; B < 128).
    x2 = x[:100]
    out2 = jax.block_until_ready(critic_forward(x2, w1, b1, w2, b2))
    ref2 = jnp.maximum(x2 @ w1 + b1, 0.0) @ w2 + b2
    assert out2.shape == (100, output_s)
    assert jnp.allclose(out2, ref2, atol=1e-4, rtol=1e-5), "ragged mismatch"

    # Multi-tile batch (exercises the grid path).
    kx3 = jax.random.split(kx)[0]
    x3 = jax.random.normal(kx3, (5000, input_s), dtype=jnp.float32)
    out3 = jax.block_until_ready(critic_forward(x3, w1, b1, w2, b2))
    ref3 = jnp.maximum(x3 @ w1 + b1, 0.0) @ w2 + b2
    assert out3.shape == (5000, output_s)
    assert jnp.allclose(out3, ref3, atol=1e-4, rtol=1e-5), "multi-tile mismatch"

    # TODO(synk): Critic.update (Adam optimizer step / backward) is training
    # logic, not part of forward; not implemented as a kernel.
    print("KERNEL_OK")
</pallas_src>

<mosaic_0001>
module attributes {stable_mosaic.version = 11 : i64} {
  func.func @critic_kernel(%arg0: i32, %arg1: memref<1x2x128xf32, #tpu.memory_space<vmem>>, %arg2: memref<120x128xf32, #tpu.memory_space<vmem>>, %arg3: memref<120x128xf32, #tpu.memory_space<vmem>>, %arg4: memref<120x128xf32, #tpu.memory_space<vmem>>, %arg5: memref<1x128xf32, #tpu.memory_space<vmem>>, %arg6: memref<1x2x128xf32, #tpu.memory_space<vmem>>) attributes {dimension_semantics = [#tpu.dimension_semantics<arbitrary>], iteration_bounds = array<i64: 1>, scalar_prefetch = 0 : i64, scratch_operands = 0 : i64, tpu.core_type = #tpu.core_type<tc>, window_params = [{transform_indices = @transform_0, window_bounds = array<i64: 1, 2, 128>}, {pipeline_mode = #tpu.pipeline_mode<synchronous>, transform_indices = @transform_1, window_bounds = array<i64: 120, 128>}, {pipeline_mode = #tpu.pipeline_mode<synchronous>, transform_indices = @transform_2, window_bounds = array<i64: 120, 128>}, {pipeline_mode = #tpu.pipeline_mode<synchronous>, transform_indices = @transform_3, window_bounds = array<i64: 120, 128>}, {pipeline_mode = #tpu.pipeline_mode<synchronous>, transform_indices = @transform_4, window_bounds = array<i64: 1, 128>}, {transform_indices = @transform_5, window_bounds = array<i64: 1, 2, 128>}]} {
    %c0 = arith.constant 0 : index
    %c0_0 = arith.constant 0 : index
    %0 = vector.load %arg5[%c0, %c0_0] : memref<1x128xf32, #tpu.memory_space<vmem>>, vector<1x128xf32>
    %c0_1 = arith.constant 0 : index
    %c0_2 = arith.constant 0 : index
    %c0_3 = arith.constant 0 : index
    %1 = vector.load %arg1[%c0_1, %c0_2, %c0_3] : memref<1x2x128xf32, #tpu.memory_space<vmem>>, vector<1x1x128xf32>
    %2 = vector.shape_cast %1 : vector<1x1x128xf32> to vector<1x128xf32>
    %c0_4 = arith.constant 0 : index
    %c0_5 = arith.constant 0 : index
    %3 = vector.load %arg2[%c0_4, %c0_5] : memref<120x128xf32, #tpu.memory_space<vmem>>, vector<120x128xf32>
    %4 = vector.broadcast %2 : vector<1x128xf32> to vector<120x128xf32>
    %5 = arith.mulf %4, %3 : vector<120x128xf32>
    %c0_6 = arith.constant 0 : index
    %c0_7 = arith.constant 0 : index
    %6 = vector.load %arg3[%c0_6, %c0_7] : memref<120x128xf32, #tpu.memory_space<vmem>>, vector<120x128xf32>
    %7 = arith.addf %5, %6 : vector<120x128xf32>
    %cst = arith.constant 0.000000e+00 : f32
    %8 = vector.broadcast %cst : f32 to vector<120x128xf32>
    %9 = arith.maximumf %7, %8 : vector<120x128xf32>
    %c0_8 = arith.constant 0 : index
    %c0_9 = arith.constant 0 : index
    %10 = vector.load %arg4[%c0_8, %c0_9] : memref<120x128xf32, #tpu.memory_space<vmem>>, vector<120x128xf32>
    %11 = arith.mulf %9, %10 : vector<120x128xf32>
    %cst_10 = arith.constant dense<0.000000e+00> : vector<128xf32>
    %12 = vector.multi_reduction <add>, %11, %cst_10 [0] : vector<120x128xf32> to vector<128xf32>
    %13 = vector.shape_cast %12 : vector<128xf32> to vector<1x128xf32>
    %14 = arith.addf %13, %0 : vector<1x128xf32>
    %c0_11 = arith.constant 0 : index
    %c0_12 = arith.constant 0 : index
    %c0_13 = arith.constant 0 : index
    %15 = vector.load %arg6[%c0_11, %c0_12, %c0_13] : memref<1x2x128xf32, #tpu.memory_space<vmem>>, vector<1x1x128xf32>
    %16 = vector.shape_cast %15 : vector<1x1x128xf32> to vector<1x128xf32>
    %17 = vector.shape_cast %14 : vector<1x128xf32> to vector<1x1x128xf32>
    tpu.vector_store %arg6[%c0_11, %c0_12, %c0_13], %17 {strides = array<i32>} : memref<1x2x128xf32, #tpu.memory_space<vmem>>, vector<1x1x128xf32>,
    %c0_14 = arith.constant 0 : index
    %c1 = arith.constant 1 : index
    %c0_15 = arith.constant 0 : index
    %18 = vector.load %arg1[%c0_14, %c1, %c0_15] : memref<1x2x128xf32, #tpu.memory_space<vmem>>, vector<1x1x128xf32>
    %19 = vector.shape_cast %18 : vector<1x1x128xf32> to vector<1x128xf32>
    %c0_16 = arith.constant 0 : index
    %c0_17 = arith.constant 0 : index
    %20 = vector.load %arg2[%c0_16, %c0_17] : memref<120x128xf32, #tpu.memory_space<vmem>>, vector<120x128xf32>
    %21 = vector.broadcast %19 : vector<1x128xf32> to vector<120x128xf32>
    %22 = arith.mulf %21, %20 : vector<120x128xf32>
    %c0_18 = arith.constant 0 : index
    %c0_19 = arith.constant 0 : index
    %23 = vector.load %arg3[%c0_18, %c0_19] : memref<120x128xf32, #tpu.memory_space<vmem>>, vector<120x128xf32>
    %24 = arith.addf %22, %23 : vector<120x128xf32>
    %cst_20 = arith.constant 0.000000e+00 : f32
    %25 = vector.broadcast %cst_20 : f32 to vector<120x128xf32>
    %26 = arith.maximumf %24, %25 : vector<120x128xf32>
    %c0_21 = arith.constant 0 : index
    %c0_22 = arith.constant 0 : index
    %27 = vector.load %arg4[%c0_21, %c0_22] : memref<120x128xf32, #tpu.memory_space<vmem>>, vector<120x128xf32>
    %28 = arith.mulf %26, %27 : vector<120x128xf32>
    %cst_23 = arith.constant dense<0.000000e+00> : vector<128xf32>
    %29 = vector.multi_reduction <add>, %28, %cst_23 [0] : vector<120x128xf32> to vector<128xf32>
    %30 = vector.shape_cast %29 : vector<128xf32> to vector<1x128xf32>
    %31 = arith.addf %30, %0 : vector<1x128xf32>
    %c0_24 = arith.constant 0 : index
    %c1_25 = arith.constant 1 : index
    %c0_26 = arith.constant 0 : index
    %32 = vector.load %arg6[%c0_24, %c1_25, %c0_26] : memref<1x2x128xf32, #tpu.memory_space<vmem>>, vector<1x1x128xf32>
    %33 = vector.shape_cast %32 : vector<1x1x128xf32> to vector<1x128xf32>
    %34 = vector.shape_cast %31 : vector<1x128xf32> to vector<1x1x128xf32>
    tpu.vector_store %arg6[%c0_24, %c1_25, %c0_26], %34 {strides = array<i32>} : memref<1x2x128xf32, #tpu.memory_space<vmem>>, vector<1x1x128xf32>,
    return
  }
  func.func @transform_0(%arg0: i32) -> (i32, i32, i32) {
    %c0_i32 = arith.constant 0 : i32
    %c0_i32_0 = arith.constant 0 : i32
    %c0_i32_1 = arith.constant 0 : i32
    return %arg0, %c0_i32, %c0_i32_0 : i32, i32, i32
  }
  func.func @transform_1(%arg0: i32) -> (i32, i32) {
    %c0_i32 = arith.constant 0 : i32
    %c0_i32_0 = arith.constant 0 : i32
    %c0_i32_1 = arith.constant 0 : i32
    return %c0_i32, %c0_i32_0 : i32, i32
  }
  func.func @transform_2(%arg0: i32) -> (i32, i32) {
    %c0_i32 = arith.constant 0 : i32
    %c0_i32_0 = arith.constant 0 : i32
    %c0_i32_1 = arith.constant 0 : i32
    return %c0_i32, %c0_i32_0 : i32, i32
  }
  func.func @transform_3(%arg0: i32) -> (i32, i32) {
    %c0_i32 = arith.constant 0 : i32
    %c0_i32_0 = arith.constant 0 : i32
    %c0_i32_1 = arith.constant 0 : i32
    return %c0_i32, %c0_i32_0 : i32, i32
  }
  func.func @transform_4(%arg0: i32) -> (i32, i32) {
    %c0_i32 = arith.constant 0 : i32
    %c0_i32_0 = arith.constant 0 : i32
    %c0_i32_1 = arith.constant 0 : i32
    return %c0_i32, %c0_i32_0 : i32, i32
  }
  func.func @transform_5(%arg0: i32) -> (i32, i32, i32) {
    %c0_i32 = arith.constant 0 : i32
    %c0_i32_0 = arith.constant 0 : i32
    %c0_i32_1 = arith.constant 0 : i32
    return %arg0, %c0_i32, %c0_i32_0 : i32, i32, i32
  }
}

</mosaic_0001>

<bundles_post_ra>
// kernel: tpu_custom_call.1
= control target key start
LH: loop header
LB: loop body
LE: loop exit
PB: predicated region body
PF: predicated region fallthrough
CT: control target
= control target key end

     0   :  { %10 = vsyncpa [#allocation3], 0  ;;  %s790_s0 = inlined_call_operand.hbm [shape: f32[1,2,128], index: 0, kind: input, shape index: {}]   ;;  %s791_s1 = inlined_call_operand.hbm [shape: f32[120,128], index: 1, kind: input, shape index: {}]   ;;  %s792_s2 = inlined_call_operand.hbm [shape: f32[120,128], index: 2, kind: input, shape index: {}]   ;;  %s793_s3 = inlined_call_operand.hbm [shape: f32[120,128], index: 3, kind: input, shape index: {}]   ;;  %s794_s4 = inlined_call_operand.vmem [shape: f32[1,128], index: 4, kind: input, shape index: {}]   ;;  %s795_s5 = inlined_call_operand.hbm [shape: f32[1,2,128], index: 5, kind: output, shape index: {}]  }
   0x1   :  { %11 = vsyncpa [#allocation6], 0 }
   0x2   :  { %12 = vsyncpa [#allocation9], 0 }
   0x3   :  { %13 = vsyncpa [#allocation4], 0  ;;  %s483_s18 = smov [#allocation5]   ;;  %s365_s22 = scalar_lea.hbm %s791_s1, 1920 }
   0x4   :  { %s29_s19 = sshll.u32 %s483_s18, 4  ;;  %p366_p0 = scmp.ne.s32.totalorder %s791_s1, %s365_s22  ;;  %s30_s19 = int_to_ptr.vmem [resolvable:$true] %s29_s19 }
   0x5   :  { %p369_p1 = scmp.lt.u32.totalorder %s365_s22, %s791_s1 }
   0x7   :  { %p371_p2 = pnand %p369_p1, %p366_p0 }
   0x9   :  { %374 = shalt.err (!%p371_p2)
}
   0xa   :  { %s375_s27 = scalar_lea.vmem %s30_s19, 1920  ;;  %p380_p4 = scmp.lt.s32.totalorder %s30_s19, %s30_s19 }
   0xb   :  { %p376_p3 = scmp.ne.s32.totalorder %s30_s19, %s375_s27  ;;  %p381_p5 = scmp.lt.s32.totalorder %s375_s27, %s375_s27 }
   0xd   :  { %p382_p6 = por %p381_p5, %p380_p4 }
   0xf   :  { %p383_p7 = pnand %p382_p6, %p376_p3 }
  0x11   :  { %386 = shalt.err (!%p383_p7)
}
  0x12   :  { %s484_s28 = smov 128   ;;  %s485_s29 = smov 8  }
  0x13   :  { %35 = dma.hbm_to_vmem [thread:$0]  %s791_s1, 1920, %s30_s19, [#allocation6], %s484_s28, %s484_s28, %s485_s29  }
  0x14   :  { %s486_s7 = smov [#allocation2]   ;;  %s487_s9 = smov [#allocation7]  }
  0x15   :  { %s20_s8 = sshll.u32 %s486_s7, 4  ;;  %s41_s10 = sshll.u32 %s487_s9, 4  ;;  %s21_s8 = int_to_ptr.vmem [resolvable:$true] %s20_s8  ;;  %s42_s10 = int_to_ptr.vmem [resolvable:$true] %s41_s10 }
  0x16   :  { %s387_s13 = scalar_lea.hbm %s790_s0, 32 }
  0x17   :  { %p388_p8 = scmp.ne.s32.totalorder %s790_s0, %s387_s13  ;;  %p391_p9 = scmp.lt.u32.totalorder %s387_s13, %s790_s0 }
  0x19   :  { %p393_p10 = pnand %p391_p9, %p388_p8 }
  0x1b   :  { %396 = shalt.err (!%p393_p10)
}
  0x1c   :  { %s397_s1 = scalar_lea.vmem %s21_s8, 32  ;;  %p402_p12 = scmp.lt.s32.totalorder %s21_s8, %s21_s8 }
  0x1d   :  { %p398_p11 = scmp.ne.s32.totalorder %s21_s8, %s397_s1  ;;  %p403_p13 = scmp.lt.s32.totalorder %s397_s1, %s397_s1 }
  0x1f   :  { %p404_p0 = por %p403_p13, %p402_p12 }
  0x21   :  { %p405_p1 = pnand %p404_p0, %p398_p11 }
  0x23   :  { %408 = shalt.err (!%p405_p1)
}
  0x24   :  { %23 = dma.hbm_to_vmem [thread:$0]  %s790_s0, 32, %s21_s8, [#allocation3]  }
  0x25   :  { %s409_s22 = scalar_lea.hbm %s792_s2, 1920 }
  0x26   :  { %p410_p2 = scmp.ne.s32.totalorder %s792_s2, %s409_s22  ;;  %p413_p3 = scmp.lt.u32.totalorder %s409_s22, %s792_s2 }
  0x28   :  { %p415_p4 = pnand %p413_p3, %p410_p2 }
  0x2a   :  { %418 = shalt.err (!%p415_p4)
}
  0x2b   :  { %s419_s27 = scalar_lea.vmem %s42_s10, 1920  ;;  %p424_p6 = scmp.lt.s32.totalorder %s42_s10, %s42_s10 }
  0x2c   :  { %p420_p5 = scmp.ne.s32.totalorder %s42_s10, %s419_s27  ;;  %p425_p7 = scmp.lt.s32.totalorder %s419_s27, %s419_s27 }
  0x2e   :  { %p426_p8 = por %p425_p7, %p424_p6 }
  0x30   :  { %p427_p9 = pnand %p426_p8, %p420_p5 }
  0x32   :  { %430 = shalt.err (!%p427_p9)
}
  0x33   :  { %47 = dma.hbm_to_vmem [thread:$0]  %s792_s2, 1920, %s42_s10, [#allocation6], %s484_s28, %s484_s28, %s485_s29  }
  0x34   :  { %s488_s6 = smov [#allocation8]   ;;  %s431_s11 = scalar_lea.hbm %s793_s3, 1920 }
  0x35   :  { %s53_s7 = sshll.u32 %s488_s6, 4  ;;  %p432_p10 = scmp.ne.s32.totalorder %s793_s3, %s431_s11  ;;  %s54_s7 = int_to_ptr.vmem [resolvable:$true] %s53_s7 }
  0x36   :  { %p435_p11 = scmp.lt.u32.totalorder %s431_s11, %s793_s3 }
  0x38   :  { %p437_p12 = pnand %p435_p11, %p432_p10 }
  0x3a   :  { %440 = shalt.err (!%p437_p12)
}
  0x3b   :  { %s441_s16 = scalar_lea.vmem %s54_s7, 1920  ;;  %p446_p0 = scmp.lt.s32.totalorder %s54_s7, %s54_s7 }
  0x3c   :  { %p442_p13 = scmp.ne.s32.totalorder %s54_s7, %s441_s16  ;;  %p447_p1 = scmp.lt.s32.totalorder %s441_s16, %s441_s16 }
  0x3e   :  { %p448_p2 = por %p447_p1, %p446_p0 }
  0x40   :  { %p449_p3 = pnand %p448_p2, %p442_p13 }
  0x42   :  { %452 = shalt.err (!%p449_p3)
}
  0x43   :  { %59 = dma.hbm_to_vmem [thread:$0]  %s793_s3, 1920, %s54_s7, [#allocation9], %s484_s28, %s484_s28, %s485_s29  }
  0x44   :  { %475 = dma.done.wait [#allocation3], 32  }
  0x45   :  { %476 = vsyncadd [#allocation3], 4294967264 }
  0x46   :  { %477 = dma.done.wait [#allocation6], 3840  }
  0x47   :  { %478 = vsyncadd [#allocation6], 4294963456 }
  0x48   :  { %479 = dma.done.wait [#allocation9], 1920  }
  0x49   :  { %480 = vsyncadd [#allocation9], 4294965376  ;;  %v577_v0 = vld [vmem:[#allocation2] ss:$0 sm:$0xff]  ;;  %v76_v1 = vld [vmem:[#allocation5] sm:$0xff]  ;;  %s489_s29 = smov [#allocation10]  }
  0x4a   :  { %v77_v2 = vld [vmem:[#allocation5 + $0x8] sm:$0xff]  ;;  %v579_v3 = vld [vmem:[#allocation5 + $0x10] sm:$0xff]  ;;  %v95_v4 = vmul.f32 %v577_v0, %v76_v1  ;;  %v582_v5 = vld [vmem:[#allocation5 + $0x18] sm:$0xff]  ;;  %s345_s17 = sshll.u32 %s489_s29, 4  ;;  %s346_s17 = int_to_ptr.vmem [resolvable:$true] %s345_s17 }
  0x4b   :  { %v96_v6 = vmul.f32 %v577_v0, %v77_v2  ;;  %v97_v7 = vmul.f32 %v577_v0, %v579_v3  ;;  %v587_v8 = vld [vmem:[#allocation5 + $0x20] sm:$0xff]  ;;  %v589_v9 = vld [vmem:[#allocation7] sm:$0xff]  ;;  %v98_v10 = vmul.f32 %v577_v0, %v582_v5  ;;  %v595_v12 = vld [vmem:[#allocation7 + $0x10] sm:$0xff]  ;;  %p458_p5 = scmp.lt.s32.totalorder %s346_s17, %s346_s17 }
  0x4c   :  { %v593_v11 = vld [vmem:[#allocation7 + $0x8] sm:$0xff]  ;;  %v125_v13 = vadd.f32 %v589_v9, %v95_v4  ;;  %v598_v14 = vld [vmem:[#allocation5 + $0x28] sm:$0xff]  ;;  %v600_v15 = vld [vmem:[#allocation7 + $0x18] sm:$0xff]  ;;  %v99_v17 = vmul.f32 %v577_v0, %v587_v8 }
  0x4d   :  { %v126_v16 = vadd.f32 %v593_v11, %v96_v6  ;;  %v127_v18 = vadd.f32 %v595_v12, %v97_v7  ;;  %v606_v19 = vld [vmem:[#allocation5 + $0x30] sm:$0xff]  ;;  %v608_v20 = vld [vmem:[#allocation7 + $0x20] sm:$0xff]  ;;  %v100_v22 = vmul.f32 %v577_v0, %v598_v14  ;;  %v128_v23 = vadd.f32 %v600_v15, %v98_v10  ;;  %v615_v26 = vld [vmem:[#allocation7 + $0x28] sm:$0xff] }
  0x4e   :  { %v610_v21 = vld [vmem:[#allocation5 + $0x38] sm:$0xff]  ;;  %v140_v24 = vmax.f32 %v125_v13, 0.0  ;;  %v617_v27 = vld [vmem:[#allocation8] sm:$0xff]  ;;  %v101_v29 = vmul.f32 %v577_v0, %v606_v19  ;;  %v129_v30 = vadd.f32 %v608_v20, %v99_v17  ;;  %v624_v32 = vld [vmem:[#allocation5 + $0x40] sm:$0xff] }
  0x4f   :  { %v141_v25 = vmax.f32 %v126_v16, 0.0  ;;  %v619_v28 = vld [vmem:[#allocation8 + $0x8] sm:$0xff]  ;;  %v142_v31 = vmax.f32 %v127_v18, 0.0  ;;  %v102_v33 = vmul.f32 %v577_v0, %v610_v21  ;;  %v628_v34 = vld [vmem:[#allocation7 + $0x30] sm:$0xff]  ;;  %v630_v35 = vld [vmem:[#allocation8 + $0x10] sm:$0xff]  ;;  %v130_v37 = vadd.f32 %v615_v26, %v100_v22 }
  0x50   :  { %v632_v36 = vld [vmem:[#allocation5 + $0x48] sm:$0xff]  ;;  %v143_v38 = vmax.f32 %v128_v23, 0.0  ;;  %v170_v39 = vmul.f32 %v617_v27, %v140_v24  ;;  %v637_v41 = vld [vmem:[#allocation7 + $0x38] sm:$0xff]  ;;  %v103_v44 = vmul.f32 %v577_v0, %v624_v32  ;;  %v131_v45 = vadd.f32 %v628_v34, %v101_v29  ;;  %v647_v48 = vld [vmem:[#allocation2 + $0x1] ss:$0 sm:$0xff] }
  0x51   :  { %v171_v40 = vmul.f32 %v619_v28, %v141_v25  ;;  %v639_v42 = vld [vmem:[#allocation8 + $0x18] sm:$0xff]  ;;  %v641_v43 = vld [vmem:[#allocation5 + $0x50] sm:$0xff]  ;;  %v144_v46 = vmax.f32 %v129_v30, 0.0  ;;  %v172_v47 = vmul.f32 %v630_v35, %v142_v31  ;;  %v104_v49 = vmul.f32 %v577_v0, %v632_v36  ;;  %v651_v50 = vld [vmem:[#allocation7 + $0x40] sm:$0xff] }
  0x52   :  { %v653_v51 = vld [vmem:[#allocation8 + $0x20] sm:$0xff]  ;;  %v655_v52 = vld [vmem:[#allocation5 + $0x58] sm:$0xff]  ;;  %v132_v53 = vadd.f32 %v637_v41, %v102_v33  ;;  %v145_v54 = vmax.f32 %v130_v37, 0.0  ;;  %v173_v55 = vmul.f32 %v639_v42, %v143_v38  ;;  %v105_v57 = vmul.f32 %v577_v0, %v641_v43  ;;  %v661_v58 = vld [vmem:[#allocation7 + $0x48] sm:$0xff] }
  0x53   :  { %v185_v56 = vadd.f32 %v171_v40, %v170_v39  ;;  %v663_v59 = vld [vmem:[#allocation8 + $0x28] sm:$0xff]  ;;  %v227_v60 = vmul.f32 %v647_v48, %v76_v1  ;;  %v228_v61 = vmul.f32 %v647_v48, %v77_v2  ;;  %v667_v62 = vld [vmem:[#allocation5 + $0x60] sm:$0xff]  ;;  %v133_v63 = vadd.f32 %v651_v50, %v103_v44  ;;  %v673_v13 = vld [vmem:[#allocation7 + $0x50] sm:$0xff] }
  0x54   :  { %v146_v4 = vmax.f32 %v131_v45, 0.0  ;;  %v174_v6 = vmul.f32 %v653_v51, %v144_v46  ;;  %v106_v10 = vmul.f32 %v577_v0, %v655_v52  ;;  %v675_v16 = vld [vmem:[#allocation8 + $0x30] sm:$0xff]  ;;  %v229_v1 = vmul.f32 %v647_v48, %v579_v3  ;;  %v679_v17 = vld [vmem:[#allocation5 + $0x68] sm:$0xff]  ;;  %v681_v2 = vld [vmem:[#allocation5 + $0x70] sm:$0xff] }
  0x55   :  { %v186_v7 = vadd.f32 %v185_v56, %v172_v47  ;;  %v134_v18 = vadd.f32 %v661_v58, %v104_v49  ;;  %v147_v22 = vmax.f32 %v132_v53, 0.0  ;;  %v175_v23 = vmul.f32 %v663_v59, %v145_v54  ;;  %v687_v29 = vld [vmem:[#allocation7 + $0x58] sm:$0xff]  ;;  %v689_v30 = vld [vmem:[#allocation8 + $0x38] sm:$0xff]  ;;  %v701_v46 = vld [vmem:[#allocation7 + $0x60] sm:$0xff] }
  0x56   :  { %v107_v25 = vmul.f32 %v577_v0, %v667_v62  ;;  %v230_v3 = vmul.f32 %v647_v48, %v582_v5  ;;  %v257_v31 = vadd.f32 %v227_v60, %v589_v9  ;;  %v258_v33 = vadd.f32 %v228_v61, %v593_v11  ;;  %v703_v47 = vld [vmem:[#allocation8 + $0x40] sm:$0xff]  ;;  %v708_v11 = vld [vmem:[#allocation7 + $0x68] sm:$0xff]  ;;  %v712_v56 = vld [vmem:[#allocation8 + $0x48] sm:$0xff] }
  0x57   :  { %v187_v24 = vadd.f32 %v186_v7, %v173_v55  ;;  %v135_v37 = vadd.f32 %v673_v13, %v105_v57  ;;  %v148_v38 = vmax.f32 %v133_v63, 0.0  ;;  %v176_v39 = vmul.f32 %v675_v16, %v146_v4 }
  0x58   :  { %v108_v44 = vmul.f32 %v577_v0, %v679_v17  ;;  %v109_v45 = vmul.f32 %v577_v0, %v681_v2  ;;  %v231_v5 = vmul.f32 %v647_v48, %v587_v8  ;;  %v259_v9 = vadd.f32 %v229_v1, %v595_v12 }
  0x59   :  { %v188_v40 = vadd.f32 %v187_v24, %v174_v6  ;;  %v136_v49 = vadd.f32 %v687_v29, %v106_v10  ;;  %v149_v53 = vmax.f32 %v134_v18, 0.0  ;;  %v177_v54 = vmul.f32 %v689_v30, %v147_v22  ;;  %v719_v6 = vld [vmem:[#allocation7 + $0x70] sm:$0xff]  ;;  %v722_v10 = vld [vmem:[#allocation8 + $0x50] sm:$0xff] }
  0x5a   :  { %v232_v0 = vmul.f32 %v647_v48, %v598_v14  ;;  %v260_v57 = vadd.f32 %v230_v3, %v600_v15  ;;  %v272_v60 = vmax.f32 %v257_v31, 0.0  ;;  %v273_v61 = vmax.f32 %v258_v33, 0.0 }
  0x5b   :  { %v189_v55 = vadd.f32 %v188_v40, %v175_v23  ;;  %v137_v8 = vadd.f32 %v701_v46, %v107_v25  ;;  %v150_v12 = vmax.f32 %v135_v37, 0.0  ;;  %v178_v63 = vmul.f32 %v703_v47, %v148_v38  ;;  %v730_v25 = vld [vmem:[#allocation8 + $0x58] sm:$0xff]  ;;  %v737_v40 = vld [vmem:[#allocation8 + $0x60] sm:$0xff] }
  0x5c   :  { %v138_v7 = vadd.f32 %v708_v11, %v108_v44  ;;  %v233_v1 = vmul.f32 %v647_v48, %v606_v19  ;;  %v261_v14 = vadd.f32 %v231_v5, %v608_v20  ;;  %v274_v15 = vmax.f32 %v259_v9, 0.0 }
  0x5d   :  { %v190_v4 = vadd.f32 %v189_v55, %v176_v39  ;;  %v151_v18 = vmax.f32 %v136_v49, 0.0  ;;  %v179_v22 = vmul.f32 %v712_v56, %v149_v53  ;;  %v234_v24 = vmul.f32 %v647_v48, %v610_v21  ;;  %v168_v49 = vld [vmem:[#allocation8 + $0x68] sm:$0xff] }
  0x5e   :  { %v262_v3 = vadd.f32 %v232_v0, %v615_v26  ;;  %v275_v31 = vmax.f32 %v260_v57, 0.0  ;;  %v302_v33 = vmul.f32 %v272_v60, %v617_v27  ;;  %v303_v37 = vmul.f32 %v273_v61, %v619_v28  ;;  %v169_v60 = vld [vmem:[#allocation8 + $0x70] sm:$0xff] }
  0x5f   :  { %v191_v23 = vadd.f32 %v190_v4, %v177_v54  ;;  %v139_v19 = vadd.f32 %v719_v6, %v109_v45  ;;  %v152_v20 = vmax.f32 %v137_v8, 0.0  ;;  %v180_v38 = vmul.f32 %v722_v10, %v150_v12 }
  0x60   :  { %v235_v21 = vmul.f32 %v647_v48, %v624_v32  ;;  %v263_v44 = vadd.f32 %v233_v1, %v628_v34  ;;  %v276_v5 = vmax.f32 %v261_v14, 0.0  ;;  %v304_v26 = vmul.f32 %v274_v15, %v630_v35 }
  0x61   :  { %v192_v39 = vadd.f32 %v191_v23, %v178_v63  ;;  %v153_v9 = vmax.f32 %v138_v7, 0.0  ;;  %v181_v27 = vmul.f32 %v730_v25, %v151_v18  ;;  %v236_v45 = vmul.f32 %v647_v48, %v632_v36 }
  0x62   :  { %v264_v53 = vadd.f32 %v234_v24, %v637_v41  ;;  %v277_v54 = vmax.f32 %v262_v3, 0.0  ;;  %v305_v55 = vmul.f32 %v275_v31, %v639_v42  ;;  %v317_v0 = vadd.f32 %v303_v37, %v302_v33 }
  0x63   :  { %v193_v28 = vadd.f32 %v192_v39, %v179_v22  ;;  %v154_v32 = vmax.f32 %v139_v19, 0.0  ;;  %v182_v34 = vmul.f32 %v737_v40, %v152_v20  ;;  %v237_v35 = vmul.f32 %v647_v48, %v641_v43 }
  0x64   :  { %v265_v61 = vadd.f32 %v235_v21, %v651_v50  ;;  %v278_v8 = vmax.f32 %v263_v44, 0.0  ;;  %v306_v36 = vmul.f32 %v276_v5, %v653_v51  ;;  %v318_v12 = vadd.f32 %v317_v0, %v304_v26 }
  0x65   :  { %v194_v57 = vadd.f32 %v193_v28, %v180_v38  ;;  %v183_v63 = vmul.f32 %v168_v49, %v153_v9  ;;  %v238_v42 = vmul.f32 %v647_v48, %v655_v52  ;;  %v266_v4 = vadd.f32 %v236_v45, %v661_v58 }
  0x66   :  { %v279_v7 = vmax.f32 %v264_v53, 0.0  ;;  %v307_v1 = vmul.f32 %v277_v54, %v663_v59  ;;  %v319_v14 = vadd.f32 %v318_v12, %v305_v55  ;;  %v184_v15 = vmul.f32 %v169_v60, %v154_v32 }
  0x67   :  { %v195_v41 = vadd.f32 %v194_v57, %v181_v27  ;;  %v239_v50 = vmul.f32 %v647_v48, %v667_v62  ;;  %v267_v18 = vadd.f32 %v237_v35, %v673_v13  ;;  %v280_v51 = vmax.f32 %v265_v61, 0.0 }
  0x68   :  { %v308_v22 = vmul.f32 %v278_v8, %v675_v16  ;;  %v320_v23 = vadd.f32 %v319_v14, %v306_v36  ;;  %v240_v52 = vmul.f32 %v647_v48, %v679_v17  ;;  %v268_v58 = vadd.f32 %v238_v42, %v687_v29 }
  0x69   :  { %v196_v43 = vadd.f32 %v195_v41, %v182_v34  ;;  %v281_v3 = vmax.f32 %v266_v4, 0.0  ;;  %v309_v59 = vmul.f32 %v279_v7, %v689_v30  ;;  %v241_v62 = vmul.f32 %v647_v48, %v681_v2 }
  0x6a   :  { %v321_v31 = vadd.f32 %v320_v23, %v307_v1  ;;  %v269_v13 = vadd.f32 %v239_v50, %v701_v46  ;;  %v282_v37 = vmax.f32 %v267_v18, 0.0  ;;  %v310_v16 = vmul.f32 %v280_v51, %v703_v47 }
  0x6b   :  { %v197_v24 = vadd.f32 %v196_v43, %v183_v63  ;;  %v270_v38 = vadd.f32 %v240_v52, %v708_v11  ;;  %v283_v17 = vmax.f32 %v268_v58, 0.0  ;;  %v311_v29 = vmul.f32 %v281_v3, %v712_v56  ;;  %v74_v56 = vld [vmem:[%s794_s4] sm:$0x1]  ;;  %s453_s4 = scalar_lea.vmem %s346_s17, 32 }
  0x6c   :  { %v322_v19 = vadd.f32 %v321_v31, %v308_v22  ;;  %v271_v30 = vadd.f32 %v241_v62, %v719_v6  ;;  %v284_v44 = vmax.f32 %v269_v13, 0.0  ;;  %v312_v5 = vmul.f32 %v282_v37, %v722_v10  ;;  %p454_p4 = scmp.ne.s32.totalorder %s346_s17, %s453_s4  ;;  %p459_p6 = scmp.lt.s32.totalorder %s453_s4, %s453_s4 }
  0x6d   :  { %v198_v33 = vadd.f32 %v197_v24, %v184_v15  ;;  %v285_v46 = vmax.f32 %v270_v38, 0.0  ;;  %v313_v26 = vmul.f32 %v283_v17, %v730_v25 }
  0x6e   :  { %v323_v39 = vadd.f32 %v322_v19, %v309_v59  ;;  %v286_v27 = vmax.f32 %v271_v30, 0.0  ;;  %v314_v11 = vmul.f32 %v284_v44, %v737_v40  ;;  %p460_p7 = por %p459_p6, %p458_p5 }
  0x6f   :  { %v199_v20 = vrot.slane %v198_v33, 4  ;;  %v315_v6 = vmul.f32 %v285_v46, %v168_v49 }
  0x70   :  { %v324_v48 = vadd.f32 %v323_v39, %v310_v16  ;;  %v316_v10 = vmul.f32 %v286_v27, %v169_v60  ;;  %p461_p8 = pnand %p460_p7, %p454_p4 }
  0x71   :  { %v200_v21 = vadd.f32 %v199_v20, %v198_v33 }
  0x72   :  { %v325_v47 = vadd.f32 %v324_v48, %v311_v29 }
  0x73   :  { %v201_v2 = vrot.slane %v200_v21, 2 }
  0x74   :  { %v326_v28 = vadd.f32 %v325_v47, %v312_v5 }
  0x75   :  { %v202_v9 = vadd.f32 %v201_v2, %v200_v21 }
  0x76   :  { %v327_v53 = vadd.f32 %v326_v28, %v313_v26 }
  0x77   :  { %v203_v45 = vrot.slane %v202_v9, 1 }
  0x78   :  { %v328_v55 = vadd.f32 %v327_v53, %v314_v11 }
  0x79   :  { %v204_v54 = vadd.f32 %v203_v45, %v202_v9 }
  0x7a   :  { %v329_v32 = vadd.f32 %v328_v55, %v315_v6 }
  0x7b   :  { %v205_v0 = vadd.f32 %v204_v54, %v74_v56 }
  0x7c   :  { %v330_v25 = vadd.f32 %v329_v32, %v316_v10 }
  0x7d   :  { %206 = vst [vmem:[#allocation10] sm:$0x1] %v205_v0 }
  0x7e   :  { %v331_v34 = vrot.slane %v330_v25, 4 }
  0x80   :  { %v332_v57 = vadd.f32 %v331_v34, %v330_v25 }
  0x82   :  { %v333_v35 = vrot.slane %v332_v57, 2 }
  0x84   :  { %v334_v61 = vadd.f32 %v333_v35, %v332_v57 }
  0x86   :  { %v335_v40 = vrot.slane %v334_v61, 1 }
  0x88   :  { %v336_v8 = vadd.f32 %v335_v40, %v334_v61 }
  0x8a   :  { %v337_v36 = vadd.f32 %v336_v8, %v74_v56 }
  0x8c   :  { %338 = vst [vmem:[#allocation10 + $0x1] sm:$0x1] %v337_v36 }
  0x8d   :  { %464 = shalt.err (!%p461_p8)
}
  0x8e   :  { %s465_s19 = scalar_lea.hbm %s795_s5, 32 }
  0x8f   :  { %p466_p9 = scmp.ne.s32.totalorder %s795_s5, %s465_s19  ;;  %p469_p10 = scmp.lt.u32.totalorder %s465_s19, %s795_s5 }
  0x91   :  { %p471_p11 = pnand %p469_p10, %p466_p9 }
  0x93   :  { %474 = shalt.err (!%p471_p11)
}
  0x94   :  { %348 = dma.vmem_to_hbm [thread:$0]  %s346_s17, 32, %s795_s5, [#allocation4]  }
  0x95   :  { %481 = dma.done.wait [#allocation4], 32  }
  0x96   :  { %482 = vsyncadd [#allocation4], 4294967264 }
  0x97   :  { %352 = vsyncpa [#allocation3], 1 }
  0x98   :  { %353 = vsyncpa [#allocation6], 1 }
  0x99   :  { %354 = vsyncpa [#allocation9], 1 }
  0x9a   :  { %355 = vsyncpa [#allocation4], 1 }

</bundles_post_ra>
